<compile_context>
chip_gen: v7x
topology: tpu7x:2x2x1
jax: 0.10.0
libtpu: 0.0.40
codegen_flags: <defaults>
</compile_context>

<pallas_src>
import functools

import jax
import jax.numpy as jnp
from jax.experimental import pallas as pl
from jax.experimental.pallas import tpu as pltpu

_HIDDEN = 256
_BIAS_ROWS = 8  # packed-bias buffer padded to a full sublane tile


def _round_up(x, m):
    return ((x + m - 1) // m) * m


def _use_bf16_epilogue():
    """bf16 bias-add/ReLU only on chips with a bf16 VALU (v6e / v7x)."""
    try:
        kind = jax.devices()[0].device_kind.lower()
    except Exception:
        return False
    return any(tag in kind for tag in ("v6", "v7", "7x"))


def _choose_batch_tile(B, batch_tile):
    """Pick the batch tile.

    - tiny / acting batches: round up to one sublane tile (8 rows);
    - batches <= 256: a single grid step, sublane-aligned;
    - replay batches: >= 2 grid steps (so dimension_semantics=('parallel',)
      feeds both v7x TensorCores), tile a multiple of 256, sized to bound
      tail padding even for unlucky batch sizes.
    """
    batch_tile = max(256, _round_up(batch_tile, 256))
    if B <= 256:
        return _round_up(max(B, 1), 8)
    n_steps = max(2, pl.cdiv(B, batch_tile))
    tb = _round_up(pl.cdiv(B, n_steps), 256)
    return min(tb, batch_tile)


def _dqn_mlp_kernel(x_ref, w1_ref, w23_ref, w4_ref, b_ref, o_ref, *, bf16_epilogue):
    hid = w1_ref.shape[1]
    n_out = o_ref.shape[-1]
    b = b_ref[...]  # (8, bias_cols) f32: rows 0..3 = b1..b4 (padded with zeros)

    def bias_relu_bf16(h_f32, row):
        bias = b[row:row + 1, :hid]
        if bf16_epilogue:
            # v6e/v7x: bf16 VALU -> half the VPU bundles; the activation has to
            # become bf16 for the next MXU pass anyway.
            return jnp.maximum(h_f32.astype(jnp.bfloat16) + bias.astype(jnp.bfloat16), 0.0)
        # v5e: no bf16 VPU path -> f32 epilogue, then one cast for the next dot.
        return jnp.maximum(h_f32 + bias, 0.0).astype(jnp.bfloat16)

    # fc1: bf16 MXU, f32 accumulation.
    x = x_ref[...].astype(jnp.bfloat16)
    h = bias_relu_bf16(jnp.dot(x, w1_ref[...], preferred_element_type=jnp.float32), 0)
    # fc2 / fc3: bf16 MXU (stacked weights), f32 accumulation.
    h = bias_relu_bf16(jnp.dot(h, w23_ref[0], preferred_element_type=jnp.float32), 1)
    h = bias_relu_bf16(jnp.dot(h, w23_ref[1], preferred_element_type=jnp.float32), 2)
    # fc4 + final ReLU (as in the original forward()); f32 epilogue, lane-dense store.
    q = jnp.dot(h, w4_ref[...], preferred_element_type=jnp.float32)
    q = jnp.maximum(q + b[3:4, :n_out], 0.0)
    o_ref[...] = q.astype(o_ref.dtype)


def pack_params(params):
    """One-time conversion of PyTorch-style f32 params into the kernel layout."""
    hidden = params["w1"].shape[1]
    n_actions = params["w4"].shape[1]
    n_pad = max(128, _round_up(n_actions, 128))     # lane-dense output width
    bias_cols = max(hidden, n_pad)

    b = jnp.zeros((_BIAS_ROWS, bias_cols), jnp.float32)
    b = b.at[0, :hidden].set(params["b1"].reshape(-1))
    b = b.at[1, :hidden].set(params["b2"].reshape(-1))
    b = b.at[2, :hidden].set(params["b3"].reshape(-1))
    b = b.at[3, :n_actions].set(params["b4"].reshape(-1))

    w4p = jnp.zeros((hidden, n_pad), jnp.float32).at[:, :n_actions].set(params["w4"])

    return {
        "w1": params["w1"].astype(jnp.bfloat16),                               # (in, 256)
        "w23": jnp.stack([params["w2"], params["w3"]]).astype(jnp.bfloat16),   # (2, 256, 256)
        "w4": w4p.astype(jnp.bfloat16),                                        # (256, n_pad)
        "b": b,                                                                # (8, bias_cols) f32
        "n_actions": n_actions,                                                # python int
    }


def dqn_forward(obs, packed, *, batch_tile=1024):
    """obs: (B, input_dim) f32  ->  Q-values (B, n_actions) f32."""
    B, input_dim = obs.shape
    hidden = packed["w1"].shape[1]
    n_pad = packed["w4"].shape[1]
    bias_cols = packed["b"].shape[1]
    n_actions = packed["n_actions"]

    TB = _choose_batch_tile(B, batch_tile)
    Bp = _round_up(B, TB)
    if Bp != B:
        obs = jnp.pad(obs, ((0, Bp - B), (0, 0)))
    grid = (Bp // TB,)

    kernel = functools.partial(_dqn_mlp_kernel, bf16_epilogue=_use_bf16_epilogue())

    out = pl.pallas_call(
        kernel,
        out_shape=jax.ShapeDtypeStruct((Bp, n_pad), jnp.float32),
        grid=grid,
        in_specs=[
            # obs: tiled over the batch axis (double-buffered by BlockSpec).
            pl.BlockSpec((TB, input_dim), lambda i: (i, 0)),
            # weights / biases: constant index_map -> VMEM-resident across steps.
            pl.BlockSpec((input_dim, hidden), lambda i: (0, 0)),
            pl.BlockSpec((2, hidden, hidden), lambda i: (0, 0, 0)),
            pl.BlockSpec((hidden, n_pad), lambda i: (0, 0)),
            pl.BlockSpec((_BIAS_ROWS, bias_cols), lambda i: (0, 0)),
        ],
        out_specs=pl.BlockSpec((TB, n_pad), lambda i: (i, 0)),
        compiler_params=pltpu.CompilerParams(
            dimension_semantics=("parallel",)),   # v7x: shard batch over both TCs
    )(obs, packed["w1"], packed["w23"], packed["w4"], packed["b"])

    return out[:B, :n_actions]


def init_params(key, input_dim, n_actions, hidden=_HIDDEN):
    """Deterministic init mimicking PyTorch nn.Linear default (U[-1/sqrt(fan_in), ..])."""
    dims = [(input_dim, hidden), (hidden, hidden), (hidden, hidden), (hidden, n_actions)]
    params = {}
    keys = jax.random.split(key, 2 * len(dims))
    for i, (fan_in, fan_out) in enumerate(dims):
        bound = 1.0 / jnp.sqrt(jnp.asarray(fan_in, jnp.float32))
        params[f"w{i + 1}"] = jax.random.uniform(
            keys[2 * i], (fan_in, fan_out), jnp.float32, minval=-bound, maxval=bound)
        params[f"b{i + 1}"] = jax.random.uniform(
            keys[2 * i + 1], (fan_out,), jnp.float32, minval=-bound, maxval=bound)
    return params


def _reference_packed(obs, packed, bf16_epilogue):
    """Pure-JAX reference following the kernel's exact dtype path (packed bf16 params)."""
    w1, w23, w4, b = packed["w1"], packed["w23"], packed["w4"], packed["b"]
    hid = w1.shape[1]
    n_actions = packed["n_actions"]

    def bias_relu(h, row):
        bias = b[row:row + 1, :hid]
        if bf16_epilogue:
            return jnp.maximum(h.astype(jnp.bfloat16) + bias.astype(jnp.bfloat16), 0.0)
        return jnp.maximum(h + bias, 0.0).astype(jnp.bfloat16)

    h = bias_relu(jnp.dot(obs.astype(jnp.bfloat16), w1, preferred_element_type=jnp.float32), 0)
    h = bias_relu(jnp.dot(h, w23[0], preferred_element_type=jnp.float32), 1)
    h = bias_relu(jnp.dot(h, w23[1], preferred_element_type=jnp.float32), 2)
    q = jnp.dot(h, w4, preferred_element_type=jnp.float32)
    q = jnp.maximum(q + b[3:4, :w4.shape[1]], 0.0)
    return q[:, :n_actions]


def _reference_f32(obs, params):
    """Full-f32 reference matching the original PyTorch module."""
    h = jnp.maximum(obs @ params["w1"] + params["b1"], 0.0)
    h = jnp.maximum(h @ params["w2"] + params["b2"], 0.0)
    h = jnp.maximum(h @ params["w3"] + params["b3"], 0.0)
    return jnp.maximum(h @ params["w4"] + params["b4"], 0.0)


if __name__ == "__main__":
    key = jax.random.PRNGKey(0)
    k_obs, k_params, k_obs2 = jax.random.split(key, 3)

    batch = 2
    input_dim = 8       # input_dims = (8,)
    n_actions = 4

    params = init_params(k_params, input_dim, n_actions)
    packed = pack_params(params)
    bf16_ep = _use_bf16_epilogue()

    # Acting-path check (B=2 -> padded to one sublane tile).
    obs = jax.random.normal(k_obs, (batch, input_dim), jnp.float32)
    q = jax.block_until_ready(dqn_forward(obs, packed))
    assert q.shape == (batch, n_actions)
    # Tight tolerance vs a reference using the identical bf16-packed dtype path.
    assert jnp.allclose(q, _reference_packed(obs, packed, bf16_ep), atol=1e-3, rtol=1e-3), \
        "mismatch vs packed (bf16) JAX reference"
    # Looser, documented tolerance vs the full-f32 PyTorch-equivalent reference:
    # bf16 weight/activation quantization -> ~1% relative error worst case.
    assert jnp.allclose(q, _reference_f32(obs, params), atol=5e-2, rtol=5e-2), \
        "mismatch vs f32 reference beyond bf16 quantization tolerance"

    # Replay-path check (multi-step grid + batch-tail padding): B=300 -> 2 grid steps.
    obs2 = jax.random.normal(k_obs2, (300, input_dim), jnp.float32)
    q2 = jax.block_until_ready(dqn_forward(obs2, packed))
    assert q2.shape == (300, n_actions)
    assert jnp.allclose(q2, _reference_packed(obs2, packed, bf16_ep), atol=1e-3, rtol=1e-3), \
        "mismatch vs packed reference on tiled replay path"

    print("KERNEL_OK")
</pallas_src>

<mosaic_0001>
module attributes {stable_mosaic.version = 11 : i64} {
  func.func @_dqn_mlp_kernel(%arg0: i32, %arg1: memref<8x8xf32, #tpu.memory_space<vmem>>, %arg2: memref<8x256xbf16, #tpu.memory_space<vmem>>, %arg3: memref<2x256x256xbf16, #tpu.memory_space<vmem>>, %arg4: memref<256x128xbf16, #tpu.memory_space<vmem>>, %arg5: memref<8x256xf32, #tpu.memory_space<vmem>>, %arg6: memref<8x128xf32, #tpu.memory_space<vmem>>) attributes {dimension_semantics = [#tpu.dimension_semantics<parallel>], iteration_bounds = array<i64: 1>, scalar_prefetch = 0 : i64, scratch_operands = 0 : i64, tpu.core_type = #tpu.core_type<tc>, window_params = [{transform_indices = @transform_0, window_bounds = array<i64: 8, 8>}, {pipeline_mode = #tpu.pipeline_mode<synchronous>, transform_indices = @transform_1, window_bounds = array<i64: 8, 256>}, {pipeline_mode = #tpu.pipeline_mode<synchronous>, transform_indices = @transform_2, window_bounds = array<i64: 2, 256, 256>}, {pipeline_mode = #tpu.pipeline_mode<synchronous>, transform_indices = @transform_3, window_bounds = array<i64: 256, 128>}, {pipeline_mode = #tpu.pipeline_mode<synchronous>, transform_indices = @transform_4, window_bounds = array<i64: 8, 256>}, {transform_indices = @transform_5, window_bounds = array<i64: 8, 128>}]} {
    %c0 = arith.constant 0 : index
    %c0_0 = arith.constant 0 : index
    %0 = vector.load %arg5[%c0, %c0_0] : memref<8x256xf32, #tpu.memory_space<vmem>>, vector<8x256xf32>
    %c0_1 = arith.constant 0 : index
    %c0_2 = arith.constant 0 : index
    %1 = vector.load %arg1[%c0_1, %c0_2] : memref<8x8xf32, #tpu.memory_space<vmem>>, vector<8x8xf32>
    %2 = arith.truncf %1 : vector<8x8xf32> to vector<8x8xbf16>
    %c0_3 = arith.constant 0 : index
    %c0_4 = arith.constant 0 : index
    %3 = vector.load %arg2[%c0_3, %c0_4] : memref<8x256xbf16, #tpu.memory_space<vmem>>, vector<8x256xbf16>
    %cst = arith.constant dense<0.000000e+00> : vector<8x256xf32>
    %4 = tpu.matmul %2, %3, %cst {dimension_numbers = #tpu.dot_dimension_numbers<[1], [0], [0], [1], [0, 0, 1, 1], [], []>} : vector<8x8xbf16>, vector<8x256xbf16>, vector<8x256xf32> -> vector<8x256xf32>
    %5 = vector.extract_strided_slice %0 {offsets = [0, 0], sizes = [1, 256], strides = [1, 1]} : vector<8x256xf32> to vector<1x256xf32>
    %6 = vector.broadcast %5 : vector<1x256xf32> to vector<8x256xf32>
    %7 = arith.addf %4, %6 : vector<8x256xf32>
    %cst_5 = arith.constant 0.000000e+00 : f32
    %8 = vector.broadcast %cst_5 : f32 to vector<8x256xf32>
    %9 = arith.maximumf %7, %8 : vector<8x256xf32>
    %10 = arith.truncf %9 : vector<8x256xf32> to vector<8x256xbf16>
    %c0_6 = arith.constant 0 : index
    %c0_7 = arith.constant 0 : index
    %c0_8 = arith.constant 0 : index
    %11 = vector.load %arg3[%c0_6, %c0_7, %c0_8] : memref<2x256x256xbf16, #tpu.memory_space<vmem>>, vector<1x256x256xbf16>
    %12 = vector.shape_cast %11 : vector<1x256x256xbf16> to vector<256x256xbf16>
    %cst_9 = arith.constant dense<0.000000e+00> : vector<8x256xf32>
    %13 = tpu.matmul %10, %12, %cst_9 {dimension_numbers = #tpu.dot_dimension_numbers<[1], [0], [0], [1], [0, 0, 1, 1], [], []>} : vector<8x256xbf16>, vector<256x256xbf16>, vector<8x256xf32> -> vector<8x256xf32>
    %14 = vector.extract_strided_slice %0 {offsets = [1, 0], sizes = [1, 256], strides = [1, 1]} : vector<8x256xf32> to vector<1x256xf32>
    %15 = vector.broadcast %14 : vector<1x256xf32> to vector<8x256xf32>
    %16 = arith.addf %13, %15 : vector<8x256xf32>
    %cst_10 = arith.constant 0.000000e+00 : f32
    %17 = vector.broadcast %cst_10 : f32 to vector<8x256xf32>
    %18 = arith.maximumf %16, %17 : vector<8x256xf32>
    %19 = arith.truncf %18 : vector<8x256xf32> to vector<8x256xbf16>
    %c1 = arith.constant 1 : index
    %c0_11 = arith.constant 0 : index
    %c0_12 = arith.constant 0 : index
    %20 = vector.load %arg3[%c1, %c0_11, %c0_12] : memref<2x256x256xbf16, #tpu.memory_space<vmem>>, vector<1x256x256xbf16>
    %21 = vector.shape_cast %20 : vector<1x256x256xbf16> to vector<256x256xbf16>
    %cst_13 = arith.constant dense<0.000000e+00> : vector<8x256xf32>
    %22 = tpu.matmul %19, %21, %cst_13 {dimension_numbers = #tpu.dot_dimension_numbers<[1], [0], [0], [1], [0, 0, 1, 1], [], []>} : vector<8x256xbf16>, vector<256x256xbf16>, vector<8x256xf32> -> vector<8x256xf32>
    %23 = vector.extract_strided_slice %0 {offsets = [2, 0], sizes = [1, 256], strides = [1, 1]} : vector<8x256xf32> to vector<1x256xf32>
    %24 = vector.broadcast %23 : vector<1x256xf32> to vector<8x256xf32>
    %25 = arith.addf %22, %24 : vector<8x256xf32>
    %cst_14 = arith.constant 0.000000e+00 : f32
    %26 = vector.broadcast %cst_14 : f32 to vector<8x256xf32>
    %27 = arith.maximumf %25, %26 : vector<8x256xf32>
    %28 = arith.truncf %27 : vector<8x256xf32> to vector<8x256xbf16>
    %c0_15 = arith.constant 0 : index
    %c0_16 = arith.constant 0 : index
    %29 = vector.load %arg4[%c0_15, %c0_16] : memref<256x128xbf16, #tpu.memory_space<vmem>>, vector<256x128xbf16>
    %cst_17 = arith.constant dense<0.000000e+00> : vector<8x128xf32>
    %30 = tpu.matmul %28, %29, %cst_17 {dimension_numbers = #tpu.dot_dimension_numbers<[1], [0], [0], [1], [0, 0, 1, 1], [], []>} : vector<8x256xbf16>, vector<256x128xbf16>, vector<8x128xf32> -> vector<8x128xf32>
    %31 = vector.extract_strided_slice %0 {offsets = [3, 0], sizes = [1, 128], strides = [1, 1]} : vector<8x256xf32> to vector<1x128xf32>
    %32 = vector.broadcast %31 : vector<1x128xf32> to vector<8x128xf32>
    %33 = arith.addf %30, %32 : vector<8x128xf32>
    %cst_18 = arith.constant 0.000000e+00 : f32
    %34 = vector.broadcast %cst_18 : f32 to vector<8x128xf32>
    %35 = arith.maximumf %33, %34 : vector<8x128xf32>
    %c0_19 = arith.constant 0 : index
    %c0_20 = arith.constant 0 : index
    %36 = vector.load %arg6[%c0_19, %c0_20] : memref<8x128xf32, #tpu.memory_space<vmem>>, vector<8x128xf32>
    tpu.vector_store %arg6[%c0_19, %c0_20], %35 {strides = array<i32>} : memref<8x128xf32, #tpu.memory_space<vmem>>, vector<8x128xf32>,
    return
  }
  func.func @transform_0(%arg0: i32) -> (i32, i32) {
    %c0_i32 = arith.constant 0 : i32
    %c0_i32_0 = arith.constant 0 : i32
    return %arg0, %c0_i32 : i32, i32
  }
  func.func @transform_1(%arg0: i32) -> (i32, i32) {
    %c0_i32 = arith.constant 0 : i32
    %c0_i32_0 = arith.constant 0 : i32
    %c0_i32_1 = arith.constant 0 : i32
    return %c0_i32, %c0_i32_0 : i32, i32
  }
  func.func @transform_2(%arg0: i32) -> (i32, i32, i32) {
    %c0_i32 = arith.constant 0 : i32
    %c0_i32_0 = arith.constant 0 : i32
    %c0_i32_1 = arith.constant 0 : i32
    %c0_i32_2 = arith.constant 0 : i32
    return %c0_i32, %c0_i32_0, %c0_i32_1 : i32, i32, i32
  }
  func.func @transform_3(%arg0: i32) -> (i32, i32) {
    %c0_i32 = arith.constant 0 : i32
    %c0_i32_0 = arith.constant 0 : i32
    %c0_i32_1 = arith.constant 0 : i32
    return %c0_i32, %c0_i32_0 : i32, i32
  }
  func.func @transform_4(%arg0: i32) -> (i32, i32) {
    %c0_i32 = arith.constant 0 : i32
    %c0_i32_0 = arith.constant 0 : i32
    %c0_i32_1 = arith.constant 0 : i32
    return %c0_i32, %c0_i32_0 : i32, i32
  }
  func.func @transform_5(%arg0: i32) -> (i32, i32) {
    %c0_i32 = arith.constant 0 : i32
    %c0_i32_0 = arith.constant 0 : i32
    return %arg0, %c0_i32 : i32, i32
  }
}

</mosaic_0001>

<bundles_post_ra>
// kernel: tpu_custom_call.1
= control target key start
LH: loop header
LB: loop body
LE: loop exit
PB: predicated region body
PF: predicated region fallthrough
CT: control target
= control target key end

     0   :  { %10 = vsyncpa [#allocation3], 0  ;;  %s1355_s0 = inlined_call_operand.hbm [shape: f32[8,8], index: 0, kind: input, shape index: {}]   ;;  %s1356_s1 = inlined_call_operand.hbm [shape: bf16[8,256], index: 1, kind: input, shape index: {}]   ;;  %s1357_s2 = inlined_call_operand.hbm [shape: bf16[2,256,256], index: 2, kind: input, shape index: {}]   ;;  %s1358_s3 = inlined_call_operand.hbm [shape: bf16[256,128], index: 3, kind: input, shape index: {}]   ;;  %s1359_s4 = inlined_call_operand.hbm [shape: f32[8,256], index: 4, kind: input, shape index: {}]   ;;  %s1360_s5 = inlined_call_operand.hbm [shape: f32[8,128], index: 5, kind: output, shape index: {}]  }
   0x1   :  { %11 = vsyncpa [#allocation6], 0 }
   0x2   :  { %12 = vsyncpa [#allocation9], 0 }
   0x3   :  { %13 = vsyncpa [#allocation4], 0  ;;  %s1211_s18 = smov [#allocation5]   ;;  %s1212_s20 = smov [#allocation8]  }
   0x4   :  { %s30_s19 = sshll.u32 %s1211_s18, 4  ;;  %s51_s21 = sshll.u32 %s1212_s20, 4  ;;  %s31_s19 = int_to_ptr.vmem [resolvable:$true] %s30_s19  ;;  %s1252_s21 = int_to_ptr.vmem [resolvable:$true] %s51_s21 }
   0x5   :  { %s1071_s24 = scalar_lea.hbm %s1356_s1, 128 }
   0x6   :  { %p1072_p0 = scmp.ne.s32.totalorder %s1356_s1, %s1071_s24  ;;  %p1075_p1 = scmp.lt.u32.totalorder %s1071_s24, %s1356_s1 }
   0x8   :  { %p1077_p2 = pnand %p1075_p1, %p1072_p0 }
   0xa   :  { %1080 = shalt.err (!%p1077_p2)
}
   0xb   :  { %s1081_s29 = scalar_lea.vmem %s31_s19, 128  ;;  %p1086_p4 = scmp.lt.s32.totalorder %s31_s19, %s31_s19 }
   0xc   :  { %p1082_p3 = scmp.ne.s32.totalorder %s31_s19, %s1081_s29  ;;  %p1087_p5 = scmp.lt.s32.totalorder %s1081_s29, %s1081_s29 }
   0xe   :  { %p1088_p6 = por %p1087_p5, %p1086_p4 }
  0x10   :  { %p1089_p7 = pnand %p1088_p6, %p1082_p3 }
  0x12   :  { %1092 = shalt.err (!%p1089_p7)
}
  0x13   :  { %33 = dma.hbm_to_vmem [thread:$0]  %s1356_s1, 128, %s31_s19, [#allocation6]  }
  0x14   :  { %s1093_s9 = scalar_lea.hbm %s1358_s3, 2048 }
  0x15   :  { %p1094_p8 = scmp.ne.s32.totalorder %s1358_s3, %s1093_s9  ;;  %p1097_p9 = scmp.lt.u32.totalorder %s1093_s9, %s1358_s3 }
  0x17   :  { %p1099_p10 = pnand %p1097_p9, %p1094_p8 }
  0x19   :  { %1102 = shalt.err (!%p1099_p10)
}
  0x1a   :  { %s1103_s14 = scalar_lea.vmem %s1252_s21, 2048  ;;  %p1108_p12 = scmp.lt.s32.totalorder %s1252_s21, %s1252_s21 }
  0x1b   :  { %p1104_p11 = scmp.ne.s32.totalorder %s1252_s21, %s1103_s14  ;;  %p1109_p13 = scmp.lt.s32.totalorder %s1103_s14, %s1103_s14 }
  0x1d   :  { %p1110_p0 = por %p1109_p13, %p1108_p12 }
  0x1f   :  { %p1111_p1 = pnand %p1110_p0, %p1104_p11 }
  0x21   :  { %1114 = shalt.err (!%p1111_p1)
}
  0x22   :  { %s1213_s1 = smov 64   ;;  %s1214_s15 = smov 4  }
  0x23   :  { %57 = dma.hbm_to_vmem [thread:$0]  %s1358_s3, 2048, %s1252_s21, [#allocation9], %s1213_s1, %s1213_s1, %s1214_s15  }
  0x24   :  { %s1215_s18 = smov [#allocation2]   ;;  %s1216_s20 = smov [#allocation7]  }
  0x25   :  { %s20_s19 = sshll.u32 %s1215_s18, 4  ;;  %s39_s22 = sshll.u32 %s1216_s20, 4  ;;  %s21_s19 = int_to_ptr.vmem [resolvable:$true] %s20_s19  ;;  %s1283_s22 = int_to_ptr.vmem [resolvable:$true] %s39_s22 }
  0x26   :  { %s1115_s25 = scalar_lea.hbm %s1355_s0, 128 }
  0x27   :  { %p1116_p2 = scmp.ne.s32.totalorder %s1355_s0, %s1115_s25  ;;  %p1119_p3 = scmp.lt.u32.totalorder %s1115_s25, %s1355_s0 }
  0x29   :  { %p1121_p4 = pnand %p1119_p3, %p1116_p2 }
  0x2b   :  { %1124 = shalt.err (!%p1121_p4)
}
  0x2c   :  { %s1125_s3 = scalar_lea.vmem %s21_s19, 128  ;;  %p1130_p6 = scmp.lt.s32.totalorder %s21_s19, %s21_s19 }
  0x2d   :  { %p1126_p5 = scmp.ne.s32.totalorder %s21_s19, %s1125_s3  ;;  %p1131_p7 = scmp.lt.s32.totalorder %s1125_s3, %s1125_s3 }
  0x2f   :  { %p1132_p8 = por %p1131_p7, %p1130_p6 }
  0x31   :  { %p1133_p9 = pnand %p1132_p8, %p1126_p5 }
  0x33   :  { %1136 = shalt.err (!%p1133_p9)
}
  0x34   :  { %23 = dma.hbm_to_vmem [thread:$0]  %s1355_s0, 128, %s21_s19, [#allocation3]  }
  0x35   :  { %s1137_s8 = scalar_lea.hbm %s1357_s2, 8192 }
  0x36   :  { %p1138_p10 = scmp.ne.s32.totalorder %s1357_s2, %s1137_s8  ;;  %p1141_p11 = scmp.lt.u32.totalorder %s1137_s8, %s1357_s2 }
  0x38   :  { %p1143_p12 = pnand %p1141_p11, %p1138_p10 }
  0x3a   :  { %1146 = shalt.err (!%p1143_p12)
}
  0x3b   :  { %s1147_s13 = scalar_lea.vmem %s1283_s22, 8192  ;;  %p1152_p0 = scmp.lt.s32.totalorder %s1283_s22, %s1283_s22 }
  0x3c   :  { %p1148_p13 = scmp.ne.s32.totalorder %s1283_s22, %s1147_s13  ;;  %p1153_p1 = scmp.lt.s32.totalorder %s1147_s13, %s1147_s13 }
  0x3e   :  { %p1154_p2 = por %p1153_p1, %p1152_p0 }
  0x40   :  { %p1155_p3 = pnand %p1154_p2, %p1148_p13 }
  0x42   :  { %1158 = shalt.err (!%p1155_p3)
}
  0x43   :  { %s1217_s0 = smov 128   ;;  %s1218_s14 = smov 8  }
  0x44   :  { %45 = dma.hbm_to_vmem [thread:$0]  %s1357_s2, 8192, %s1283_s22, [#allocation6], %s1217_s0, %s1217_s0, %s1218_s14  }
  0x45   :  { %s1219_s16 = smov [#allocation10]   ;;  %s1159_s20 = scalar_lea.hbm %s1359_s4, 256 }
  0x46   :  { %s64_s17 = sshll.u32 %s1219_s16, 4  ;;  %p1160_p4 = scmp.ne.s32.totalorder %s1359_s4, %s1159_s20  ;;  %s65_s17 = int_to_ptr.vmem [resolvable:$true] %s64_s17 }
  0x47   :  { %p1163_p5 = scmp.lt.u32.totalorder %s1159_s20, %s1359_s4 }
  0x49   :  { %p1165_p6 = pnand %p1163_p5, %p1160_p4 }
  0x4b   :  { %1168 = shalt.err (!%p1165_p6)
}
  0x4c   :  { %s1169_s27 = scalar_lea.vmem %s65_s17, 256  ;;  %p1174_p8 = scmp.lt.s32.totalorder %s65_s17, %s65_s17 }
  0x4d   :  { %p1170_p7 = scmp.ne.s32.totalorder %s65_s17, %s1169_s27  ;;  %p1175_p9 = scmp.lt.s32.totalorder %s1169_s27, %s1169_s27 }
  0x4f   :  { %p1176_p10 = por %p1175_p9, %p1174_p8 }
  0x51   :  { %p1177_p11 = pnand %p1176_p10, %p1170_p7 }
  0x53   :  { %1180 = shalt.err (!%p1177_p11)
}
  0x54   :  { %67 = dma.hbm_to_vmem [thread:$0]  %s1359_s4, 256, %s65_s17, [#allocation9]  }
  0x55   :  { %1203 = dma.done.wait [#allocation3], 128  }
  0x56   :  { %1204 = vsyncadd [#allocation3], 4294967168 }
  0x57   :  { %1205 = dma.done.wait [#allocation6], 8320  }
  0x58   :  { %1206 = vsyncadd [#allocation6], 4294958976 }
  0x59   :  { %1207 = dma.done.wait [#allocation9], 2304  }
  0x5a   :  { %1208 = vsyncadd [#allocation9], 4294964992  ;;  %v1220_v0 = vmov 0   ;;  %v88_v1 = vld [vmem:[#allocation5] sm:$0xff]  ;;  %vm106_vm0 = vcmask 1043456   ;;  %v86_v2 = vld [vmem:[#allocation2] sm:$0xff] }
  0x5b   :  { %145 = vmatprep.mubr.bf16.mxu0 %v1220_v0  ;;  %v841_v3 = vcombine.high %v88_v1, %v88_v1  ;;  %v840_v4 = vcombine.low %v88_v1, %v88_v1  ;;  %v959_v5 = vld [vmem:[#allocation7 + $0x4] ss:$8 sps:$4 sm:$0xff]   ;;  %v961_v6 = vld [vmem:[#allocation7] ss:$8 sps:$4 sm:$0xff]   ;;  %v962_v7 = vld [vmem:[#allocation7 + $0x14] ss:$8 sps:$4 sm:$0xff]   ;;  %v87_v9 = vpack.c.bf16 %v86_v2, %v86_v2 }
  0x5c   :  { %358 = vmatprep.subr.bf16.mxu1 %v959_v5  ;;  %vm102_vm1 = vcmask 64512   ;;  %v964_v10 = vld [vmem:[#allocation7 + $0x10] ss:$8 sps:$4 sm:$0xff]   ;;  %v965_v11 = vld [vmem:[#allocation7 + $0x24] ss:$8 sps:$4 sm:$0xff]   ;;  %s1221_s4 = smov [#allocation11]  }
  0x5d   :  { %842 = vmatprep.subr.msk.bf16.mxu0 %vm106_vm0, %v841_v3  ;;  %v108_v8 = vsel %vm106_vm0, %v840_v4, 0  ;;  %359 = vmatpush1.bf16.msra.mxu1 %v961_v6  ;;  %v967_v12 = vld [vmem:[#allocation7 + $0x20] ss:$8 sps:$4 sm:$0xff]   ;;  %v968_v13 = vld [vmem:[#allocation7 + $0x34] ss:$8 sps:$4 sm:$0xff]   ;;  %v89_v3 = vlaneseq  ;;  %s829_s28 = sshll.u32 %s1221_s4, 4  ;;  %s830_s28 = int_to_ptr.vmem [resolvable:$true] %s829_s28 }
  0x5e   :  { %114 = vmatpush1.bf16.msra.mxu0 %v108_v8  ;;  %360 = vmatprep.subr.bf16.mxu1 %v962_v7  ;;  %v970_v14 = vld [vmem:[#allocation7 + $0x30] ss:$8 sps:$4 sm:$0xff]   ;;  %v971_v15 = vld [vmem:[#allocation7 + $0x44] ss:$8 sps:$4 sm:$0xff]   ;;  %v973_v16 = vld [vmem:[#allocation7 + $0x40] ss:$8 sps:$4 sm:$0xff]   ;;  %p1186_p13 = scmp.lt.s32.totalorder %s830_s28, %s830_s28 }
  0x5f   :  { %v974_v17 = vld [vmem:[#allocation7 + $0x54] ss:$8 sps:$4 sm:$0xff]   ;;  %v976_v18 = vld [vmem:[#allocation7 + $0x50] ss:$8 sps:$4 sm:$0xff]   ;;  %v977_v19 = vld [vmem:[#allocation7 + $0x64] ss:$8 sps:$4 sm:$0xff]  }
  0x60   :  { %v979_v20 = vld [vmem:[#allocation7 + $0x60] ss:$8 sps:$4 sm:$0xff]   ;;  %v980_v21 = vld [vmem:[#allocation7 + $0x74] ss:$8 sps:$4 sm:$0xff]   ;;  %v982_v22 = vld [vmem:[#allocation7 + $0x70] ss:$8 sps:$4 sm:$0xff]  }
  0x61   :  { %843 = vmatmul.mubr.msk.bf16.vlgmr.msra.gmra.mrb[0].mxu0 %vm102_vm1, %v87_v9  ;;  %361 = vmatpush1.bf16.msra.mxu1 %v964_v10  ;;  %v983_v23 = vld [vmem:[#allocation7 + $0x84] ss:$8 sps:$4 sm:$0xff]   ;;  %v985_v24 = vld [vmem:[#allocation7 + $0x80] ss:$8 sps:$4 sm:$0xff]   ;;  %v986_v25 = vld [vmem:[#allocation7 + $0x94] ss:$8 sps:$4 sm:$0xff]  }
  0x62   :  { %362 = vmatprep.subr.bf16.mxu1 %v965_v11  ;;  %v988_v26 = vld [vmem:[#allocation7 + $0x90] ss:$8 sps:$4 sm:$0xff]   ;;  %v989_v27 = vld [vmem:[#allocation7 + $0xa4] ss:$8 sps:$4 sm:$0xff]   ;;  %v991_v28 = vld [vmem:[#allocation7 + $0xa0] ss:$8 sps:$4 sm:$0xff]  }
  0x63   :  { %v992_v29 = vld [vmem:[#allocation7 + $0xb4] ss:$8 sps:$4 sm:$0xff]   ;;  %v994_v30 = vld [vmem:[#allocation7 + $0xb0] ss:$8 sps:$4 sm:$0xff]   ;;  %v995_v31 = vld [vmem:[#allocation7 + $0xc4] ss:$8 sps:$4 sm:$0xff]  }
  0x64   :  { %v997_v32 = vld [vmem:[#allocation7 + $0xc0] ss:$8 sps:$4 sm:$0xff]   ;;  %v998_v33 = vld [vmem:[#allocation7 + $0xd4] ss:$8 sps:$4 sm:$0xff]   ;;  %v1000_v34 = vld [vmem:[#allocation7 + $0xd0] ss:$8 sps:$4 sm:$0xff]  }
  0x65   :  { %363 = vmatpush1.bf16.msra.mxu1 %v967_v12  ;;  %v1001_v35 = vld [vmem:[#allocation7 + $0xe4] ss:$8 sps:$4 sm:$0xff]   ;;  %v1003_v36 = vld [vmem:[#allocation7 + $0xe0] ss:$8 sps:$4 sm:$0xff]   ;;  %v1004_v37 = vld [vmem:[#allocation7 + $0xf4] ss:$8 sps:$4 sm:$0xff]  }
  0x66   :  { %364 = vmatprep.subr.bf16.mxu1 %v968_v13  ;;  %v1006_v38 = vld [vmem:[#allocation7 + $0xf0] ss:$8 sps:$4 sm:$0xff]   ;;  %v1007_v39 = vld [vmem:[#allocation7 + $0x100] ss:$8 sps:$4 sm:$0xff]   ;;  %v1009_v40 = vld [vmem:[#allocation7 + $0x104] ss:$8 sps:$4 sm:$0xff]  }
  0x67   :  { %v1012_v41 = vld [vmem:[#allocation7 + $0x114] ss:$8 sps:$4 sm:$0xff]   ;;  %604 = vmatprep.subr.bf16.mxu0 %v1009_v40  ;;  %v1010_v42 = vld [vmem:[#allocation7 + $0x110] ss:$8 sps:$4 sm:$0xff]   ;;  %v1015_v43 = vld [vmem:[#allocation7 + $0x124] ss:$8 sps:$4 sm:$0xff]  }
  0x68   :  { %605 = vmatpush1.bf16.msra.mxu0 %v1007_v39  ;;  %v1013_v44 = vld [vmem:[#allocation7 + $0x120] ss:$8 sps:$4 sm:$0xff]   ;;  %v1018_v45 = vld [vmem:[#allocation7 + $0x134] ss:$8 sps:$4 sm:$0xff]   ;;  %v1016_v46 = vld [vmem:[#allocation7 + $0x130] ss:$8 sps:$4 sm:$0xff]  }
  0x69   :  { %365 = vmatpush1.bf16.msra.mxu1 %v970_v14  ;;  %606 = vmatprep.subr.bf16.mxu0 %v1012_v41  ;;  %v1021_v47 = vld [vmem:[#allocation7 + $0x144] ss:$8 sps:$4 sm:$0xff]   ;;  %v1019_v48 = vld [vmem:[#allocation7 + $0x140] ss:$8 sps:$4 sm:$0xff]   ;;  %v1024_v49 = vld [vmem:[#allocation7 + $0x154] ss:$8 sps:$4 sm:$0xff]  }
  0x6a   :  { %366 = vmatprep.subr.bf16.mxu1 %v971_v15  ;;  %v1022_v50 = vld [vmem:[#allocation7 + $0x150] ss:$8 sps:$4 sm:$0xff]   ;;  %v1027_v51 = vld [vmem:[#allocation7 + $0x164] ss:$8 sps:$4 sm:$0xff]   ;;  %v1025_v52 = vld [vmem:[#allocation7 + $0x160] ss:$8 sps:$4 sm:$0xff]  }
  0x6b   :  { %v1030_v53 = vld [vmem:[#allocation7 + $0x174] ss:$8 sps:$4 sm:$0xff]   ;;  %v1028_v54 = vld [vmem:[#allocation7 + $0x170] ss:$8 sps:$4 sm:$0xff]   ;;  %v1033_v55 = vld [vmem:[#allocation7 + $0x184] ss:$8 sps:$4 sm:$0xff]  }
  0x6c   :  { %607 = vmatpush1.bf16.msra.mxu0 %v1010_v42  ;;  %v1031_v56 = vld [vmem:[#allocation7 + $0x180] ss:$8 sps:$4 sm:$0xff]   ;;  %v1036_v57 = vld [vmem:[#allocation7 + $0x194] ss:$8 sps:$4 sm:$0xff]   ;;  %v1034_v58 = vld [vmem:[#allocation7 + $0x190] ss:$8 sps:$4 sm:$0xff]  }
  0x6d   :  { %367 = vmatpush1.bf16.msra.mxu1 %v973_v16  ;;  %608 = vmatprep.subr.bf16.mxu0 %v1015_v43  ;;  %v1039_v59 = vld [vmem:[#allocation7 + $0x1a4] ss:$8 sps:$4 sm:$0xff]   ;;  %v1037_v60 = vld [vmem:[#allocation7 + $0x1a0] ss:$8 sps:$4 sm:$0xff]   ;;  %v1042_v61 = vld [vmem:[#allocation7 + $0x1b4] ss:$8 sps:$4 sm:$0xff]  }
  0x6e   :  { %368 = vmatprep.subr.bf16.mxu1 %v974_v17  ;;  %v1040_v62 = vld [vmem:[#allocation7 + $0x1b0] ss:$8 sps:$4 sm:$0xff]   ;;  %v1045_v63 = vld [vmem:[#allocation7 + $0x1c4] ss:$8 sps:$4 sm:$0xff]   ;;  %v1043_v0 = vld [vmem:[#allocation7 + $0x1c0] ss:$8 sps:$4 sm:$0xff]  }
  0x6f   :  { %v1048_v1 = vld [vmem:[#allocation7 + $0x1d4] ss:$8 sps:$4 sm:$0xff]   ;;  %v1046_v2 = vld [vmem:[#allocation7 + $0x1d0] ss:$8 sps:$4 sm:$0xff]   ;;  %v1326_v4 = vshrl.u32 %v89_v3, 7  ;;  %v1329_v6 = vld [vmem:[#allocation10] sm:$0xff] }
  0x70   :  { %609 = vmatpush1.bf16.msra.mxu0 %v1013_v44  ;;  %v1331_v7 = vld [vmem:[#allocation10 + $0x8] sm:$0xff]  ;;  %s1181_s29 = scalar_lea.vmem %s830_s28, 128 }
  0x71   :  { %369 = vmatpush1.bf16.msra.mxu1 %v976_v18  ;;  %610 = vmatprep.subr.bf16.mxu0 %v1018_v45  ;;  %v91_v5 = vsub.s32 0, %v1326_v4  ;;  %p1182_p12 = scmp.ne.s32.totalorder %s830_s28, %s1181_s29  ;;  %p1187_p0 = scmp.lt.s32.totalorder %s1181_s29, %s1181_s29 }
  0x72   :  { %370 = vmatprep.subr.bf16.mxu1 %v977_v19 }
  0x73   :  { %v92_v8 = vrot.slane %v1329_v6, %v91_v5  ;;  %v96_v9 = vrot.slane %v1331_v7, %v91_v5  ;;  %p1188_p1 = por %p1187_p0, %p1186_p13 }
  0x74   :  { %611 = vmatpush1.bf16.msra.mxu0 %v1016_v46 }
  0x75   :  { %371 = vmatpush1.bf16.msra.mxu1 %v979_v20  ;;  %612 = vmatprep.subr.bf16.mxu0 %v1021_v47  ;;  %v1051_v20 = vld [vmem:[#allocation7 + $0x1e4] ss:$8 sps:$4 sm:$0xff]   ;;  %p1189_p2 = pnand %p1188_p1, %p1182_p12 }
  0x76   :  { %372 = vmatprep.subr.bf16.mxu1 %v980_v21  ;;  %v1049_v21 = vld [vmem:[#allocation7 + $0x1e0] ss:$8 sps:$4 sm:$0xff]  }
  0x78   :  { %613 = vmatpush1.bf16.msra.mxu0 %v1019_v48 }
  0x79   :  { %373 = vmatpush1.bf16.msra.mxu1 %v982_v22  ;;  %614 = vmatprep.subr.bf16.mxu0 %v1024_v49  ;;  %v1054_v22 = vld [vmem:[#allocation7 + $0x1f4] ss:$8 sps:$4 sm:$0xff]  }
  0x7a   :  { %374 = vmatprep.subr.bf16.mxu1 %v983_v23  ;;  %v1052_v23 = vld [vmem:[#allocation7 + $0x1f0] ss:$8 sps:$4 sm:$0xff]  }
  0x7b   :  { %v1067_v49 = vld [vmem:[#allocation8 + $0x70] sm:$0xff]  }
  0x7c   :  { %615 = vmatpush1.bf16.msra.mxu0 %v1022_v50  ;;  %v1068_v50 = vld [vmem:[#allocation8 + $0x30] sm:$0xff]  }
  0x7d   :  { %375 = vmatpush1.bf16.msra.mxu1 %v985_v24  ;;  %616 = vmatprep.subr.bf16.mxu0 %v1027_v51  ;;  %v1055_v24 = vld [vmem:[#allocation8 + $0x40] sm:$0xff]   ;;  %v1069_v51 = vld [vmem:[#allocation8 + $0x78] sm:$0xff]  }
  0x7e   :  { %376 = vmatprep.subr.bf16.mxu1 %v986_v25  ;;  %v1056_v25 = vld [vmem:[#allocation8] sm:$0xff]  }
  0x80   :  { %617 = vmatpush1.bf16.msra.mxu0 %v1025_v52  ;;  %v1070_v52 = vld [vmem:[#allocation8 + $0x38] sm:$0xff]  }
  0x81   :  { %377 = vmatpush1.bf16.msra.mxu1 %v988_v26  ;;  %618 = vmatprep.subr.bf16.mxu0 %v1030_v53  ;;  %v1057_v26 = vld [vmem:[#allocation8 + $0x48] sm:$0xff]   ;;  %v438_v53 = vsub.s32 2, %v1326_v4 }
  0x82   :  { %378 = vmatprep.subr.bf16.mxu1 %v989_v27  ;;  %v1058_v27 = vld [vmem:[#allocation8 + $0x8] sm:$0xff]  }
  0x84   :  { %619 = vmatpush1.bf16.msra.mxu0 %v1028_v54  ;;  %v439_v54 = vrot.slane %v1329_v6, %v438_v53 }
  0x85   :  { %379 = vmatpush1.bf16.msra.mxu1 %v991_v28  ;;  %620 = vmatprep.subr.bf16.mxu0 %v1033_v55  ;;  %v1059_v28 = vld [vmem:[#allocation8 + $0x50] sm:$0xff]   ;;  %v443_v55 = vrot.slane %v1331_v7, %v438_v53 }
  0x86   :  { %380 = vmatprep.subr.bf16.mxu1 %v992_v29  ;;  %v1060_v29 = vld [vmem:[#allocation8 + $0x10] sm:$0xff]  }
  0x88   :  { %621 = vmatpush1.bf16.msra.mxu0 %v1031_v56 }
  0x89   :  { %381 = vmatpush1.bf16.msra.mxu1 %v994_v30  ;;  %622 = vmatprep.subr.bf16.mxu0 %v1036_v57  ;;  %v1061_v30 = vld [vmem:[#allocation8 + $0x58] sm:$0xff]  }
  0x8a   :  { %382 = vmatprep.subr.bf16.mxu1 %v995_v31  ;;  %v1062_v31 = vld [vmem:[#allocation8 + $0x18] sm:$0xff]  }
  0x8c   :  { %623 = vmatpush1.bf16.msra.mxu0 %v1034_v58 }
  0x8d   :  { %383 = vmatpush1.bf16.msra.mxu1 %v997_v32  ;;  %624 = vmatprep.subr.bf16.mxu0 %v1039_v59  ;;  %v1063_v32 = vld [vmem:[#allocation8 + $0x60] sm:$0xff]  }
  0x8e   :  { %384 = vmatprep.subr.bf16.mxu1 %v998_v33  ;;  %v1064_v33 = vld [vmem:[#allocation8 + $0x20] sm:$0xff]  }
  0x90   :  { %625 = vmatpush1.bf16.msra.mxu0 %v1037_v60 }
  0x91   :  { %385 = vmatpush1.bf16.msra.mxu1 %v1000_v34  ;;  %626 = vmatprep.subr.bf16.mxu0 %v1042_v61  ;;  %v1065_v34 = vld [vmem:[#allocation8 + $0x68] sm:$0xff]  }
  0x92   :  { %386 = vmatprep.subr.bf16.mxu1 %v1001_v35  ;;  %v1066_v35 = vld [vmem:[#allocation8 + $0x28] sm:$0xff]  }
  0x94   :  { %627 = vmatpush1.bf16.msra.mxu0 %v1040_v62 }
  0x95   :  { %387 = vmatpush1.bf16.msra.mxu1 %v1003_v36  ;;  %628 = vmatprep.subr.bf16.mxu0 %v1045_v63  ;;  %v192_v36 = vsub.s32 1, %v1326_v4 }
  0x96   :  { %388 = vmatprep.subr.bf16.mxu1 %v1004_v37 }
  0x97   :  { %v193_v37 = vrot.slane %v1329_v6, %v192_v36 }
  0x98   :  { %629 = vmatpush1.bf16.msra.mxu0 %v1043_v0 }
  0x99   :  { %389 = vmatpush1.bf16.msra.mxu1 %v1006_v38  ;;  %630 = vmatprep.subr.bf16.mxu0 %v1048_v1  ;;  %v197_v38 = vrot.slane %v1331_v7, %v192_v36 }
  0x9a   :  { %924 = vmatprep.subr.bf16.mxu1 %v1055_v24 }
  0x9c   :  { %631 = vmatpush1.bf16.msra.mxu0 %v1046_v2  ;;  %v683_v2 = vsub.s32 3, %v1326_v4 }
  0x9d   :  { %632 = vmatprep.subr.bf16.mxu0 %v1051_v20 }
  0x9e   :  { %v684_v5 = vrot.slane %v1329_v6, %v683_v2 }
  0xa0   :  { %633 = vmatpush1.bf16.msra.mxu0 %v1049_v21 }
  0xa1   :  { %634 = vmatprep.subr.bf16.mxu0 %v1054_v22 }
  0xa4   :  { %635 = vmatpush1.bf16.msra.mxu0 %v1052_v23 }
 0x134   :  { %v147_v10 = vpop.f32.mrb[0].mxu0 }
 0x135   :  { %v148_v11 = vadd.f32 %v147_v10, %v92_v8  ;;  %v149_v12 = vpop.f32.mrb[1].mxu0 }
 0x136   :  { %v150_v13 = vadd.f32 %v149_v12, %v96_v9  ;;  %v151_v14 = vpop.f32.mrb[2].mxu0 }
 0x137   :  { %v154_v15 = vmax.f32 %v148_v11, 0.0  ;;  %v152_v16 = vpop.f32.mrb[3].mxu0 }
 0x138   :  { %v155_v17 = vmax.f32 %v150_v13, 0.0 }
 0x139   :  { %v156_v19 = vpack.c.bf16 %v154_v15, %v154_v15 }
 0x13a   :  { %v157_v18 = vpack.c.bf16 %v155_v17, %v155_v17 }
 0x13c   :  { %390 = vmatprep.mubr.bf16.mxu1 %v157_v18 }
 0x13d   :  { %391 = vmatmul.mubr.bf16.vlgmr.msra.gmra.mrb[0].mxu1 %v156_v19 }
 0x13e   :  { %925 = vmatpush3.bf16.msra.mxu1 %v1056_v25 }
 0x13f   :  { %926 = vmatprep.subr.bf16.mxu1 %v1057_v26 }
 0x142   :  { %927 = vmatpush3.bf16.msra.mxu1 %v1058_v27 }
 0x143   :  { %928 = vmatprep.subr.bf16.mxu1 %v1059_v28 }
 0x146   :  { %929 = vmatpush3.bf16.msra.mxu1 %v1060_v29 }
 0x147   :  { %930 = vmatprep.subr.bf16.mxu1 %v1061_v30 }
 0x14a   :  { %931 = vmatpush3.bf16.msra.mxu1 %v1062_v31 }
 0x14b   :  { %932 = vmatprep.subr.bf16.mxu1 %v1063_v32 }
 0x14e   :  { %933 = vmatpush3.bf16.msra.mxu1 %v1064_v33 }
 0x14f   :  { %934 = vmatprep.subr.bf16.mxu1 %v1065_v34 }
 0x152   :  { %935 = vmatpush3.bf16.msra.mxu1 %v1066_v35 }
 0x153   :  { %936 = vmatprep.subr.bf16.mxu1 %v1067_v49 }
 0x156   :  { %937 = vmatpush3.bf16.msra.mxu1 %v1068_v50 }
 0x157   :  { %938 = vmatprep.subr.bf16.mxu1 %v1069_v51 }
 0x15a   :  { %939 = vmatpush3.bf16.msra.mxu1 %v1070_v52 }
 0x210   :  { %v392_v39 = vpop.f32.mrb[0].mxu1 }
 0x211   :  { %v393_v40 = vadd.f32 %v392_v39, %v193_v37  ;;  %v394_v41 = vpop.f32.mrb[1].mxu1 }
 0x212   :  { %v395_v42 = vadd.f32 %v394_v41, %v197_v38  ;;  %v396_v43 = vpop.f32.mrb[2].mxu1 }
 0x213   :  { %v399_v44 = vmax.f32 %v393_v40, 0.0  ;;  %v397_v45 = vpop.f32.mrb[3].mxu1 }
 0x214   :  { %v400_v46 = vmax.f32 %v395_v42, 0.0 }
 0x215   :  { %v401_v48 = vpack.c.bf16 %v399_v44, %v399_v44 }
 0x216   :  { %v402_v47 = vpack.c.bf16 %v400_v46, %v400_v46 }
 0x218   :  { %636 = vmatprep.mubr.bf16.mxu0 %v402_v47 }
 0x219   :  { %637 = vmatmul.mubr.bf16.vlgmr.msra.gmra.mrb[4].mxu0 %v401_v48 }
 0x2ec   :  { %v638_v56 = vpop.f32.mrb[4].mxu0 }
 0x2ed   :  { %v639_v57 = vadd.f32 %v638_v56, %v439_v54  ;;  %v640_v58 = vpop.f32.mrb[5].mxu0 }
 0x2ee   :  { %v641_v59 = vadd.f32 %v640_v58, %v443_v55  ;;  %v642_v60 = vpop.f32.mrb[6].mxu0 }
 0x2ef   :  { %v645_v61 = vmax.f32 %v639_v57, 0.0  ;;  %v643_v62 = vpop.f32.mrb[7].mxu0 }
 0x2f0   :  { %v646_v63 = vmax.f32 %v641_v59, 0.0 }
 0x2f1   :  { %v647_v1 = vpack.c.bf16 %v645_v61, %v645_v61 }
 0x2f2   :  { %v648_v0 = vpack.c.bf16 %v646_v63, %v646_v63 }
 0x2f4   :  { %813 = vmatprep.mubr.bf16.mxu1 %v648_v0 }
 0x2f5   :  { %814 = vmatmul.mubr.bf16.vlgmr.msra.gmra.mrb[4].mxu1 %v647_v1 }
 0x3c8   :  { %v940_v3 = vpop.f32.mrb[4].mxu1 }
 0x3c9   :  { %v941_v8 = vpop.f32.mrb[5].mxu1 }
 0x3ca   :  { %v942_v9 = vadd.f32 %v941_v8, %v940_v3  ;;  %v943_v7 = vpop.f32.mrb[6].mxu1 }
 0x3cb   :  { %v944_v10 = vpop.f32.mrb[7].mxu1 }
 0x3cc   :  { %v816_v11 = vadd.f32 %v942_v9, %v684_v5 }
 0x3ce   :  { %v821_v12 = vmax.f32 %v816_v11, 0.0 }
 0x3d0   :  { %822 = vst [vmem:[#allocation11] sm:$0xff] %v821_v12 }
 0x3d1   :  { %1192 = shalt.err (!%p1189_p2)
}
 0x3d2   :  { %s1193_s30 = scalar_lea.hbm %s1360_s5, 128 }
 0x3d3   :  { %p1194_p3 = scmp.ne.s32.totalorder %s1360_s5, %s1193_s30  ;;  %p1197_p4 = scmp.lt.u32.totalorder %s1193_s30, %s1360_s5 }
 0x3d5   :  { %p1199_p5 = pnand %p1197_p4, %p1194_p3 }
 0x3d7   :  { %1202 = shalt.err (!%p1199_p5)
}
 0x3d8   :  { %832 = dma.vmem_to_hbm [thread:$0]  %s830_s28, 128, %s1360_s5, [#allocation4]  }
 0x3d9   :  { %1209 = dma.done.wait [#allocation4], 128  }
 0x3da   :  { %1210 = vsyncadd [#allocation4], 4294967168 }
 0x3db   :  { %836 = vsyncpa [#allocation3], 1 }
 0x3dc   :  { %837 = vsyncpa [#allocation6], 1 }
 0x3dd   :  { %838 = vsyncpa [#allocation9], 1 }
 0x3de   :  { %839 = vsyncpa [#allocation4], 1 }

</bundles_post_ra>
